<compile_context>
chip_gen: v7x
topology: tpu7x:2x2x1
jax: 0.10.0
libtpu: 0.0.40
codegen_flags: <defaults>
</compile_context>

<pallas_src>
import functools

import jax
import jax.numpy as jnp
from jax.experimental import pallas as pl
from jax.experimental.pallas import tpu as pltpu


def _round_up(a, b):
    return (a + b - 1) // b * b


def _vmem_capacity_bytes():
    try:
        info = pltpu.get_tpu_info()
        cap = getattr(info, "vmem_capacity_bytes", None)
        if cap:
            return int(cap)
    except Exception:
        pass
    return 64 * 1024 * 1024  # conservative default (v7x per-TC VMEM)


def _layer_norm(z, g, b, eps=1e-5):
    mu = jnp.mean(z, axis=-1, keepdims=True)
    var = jnp.mean((z - mu) ** 2, axis=-1, keepdims=True)
    return (z - mu) * jax.lax.rsqrt(var + eps) * g + b


# ----------------------------- Pallas kernel ---------------------------------

def _ff_kernel(x_ref, w1_ref, b1_ref, w2_ref, b2_ref, g_ref, bb_ref,
               o_ref, xin_ref, *, pre_lnorm):
    # Grid: (row tiles [parallel], d_inner tiles [arbitrary]).  In the common case the whole
    # (padded) d_inner fits one tile (n_k == 1) and the weights are VMEM-resident.
    k = pl.program_id(1)
    nk = pl.num_programs(1)

    @pl.when(k == 0)
    def _():
        x = x_ref[...]                                           # (tm, dm) f32
        xin = _layer_norm(x, g_ref[...], bb_ref[...]) if pre_lnorm else x
        xin_ref[...] = xin.astype(jnp.bfloat16)                  # hoisted LN + bf16 cast
        o_ref[...] = jnp.zeros_like(o_ref)                       # f32 accumulator = output block

    # Linear1 slice + bias + ReLU  (bf16 operands, f32 accumulation on the MXU)
    h = jnp.dot(xin_ref[...], w1_ref[...],
                preferred_element_type=jnp.float32) + b1_ref[...]
    h = jnp.maximum(h, 0.0)                                      # (tm, tdi) f32

    # Partial Linear2 contribution, accumulated directly into the resident output block.
    o_ref[...] += jnp.dot(h.astype(jnp.bfloat16), w2_ref[...],
                          preferred_element_type=jnp.float32)

    @pl.when(k == nk - 1)
    def _():
        y = o_ref[...] + b2_ref[...]
        x = x_ref[...]
        if pre_lnorm:
            o_ref[...] = x + y
        else:
            o_ref[...] = _layer_norm(x + y, g_ref[...], bb_ref[...])


# ----------------------------- wrapper ----------------------------------------

def prepare_positionwise_ff(params, *, pre_lnorm=False, tm_max=256):
    """One-time weight preparation (transpose / pad / bf16 cast) + tile plan.
    params use torch nn.Linear layout: W1 (d_inner, d_model), b1 (d_inner,),
    W2 (d_model, d_inner), b2 (d_model,), ln_g / ln_b (d_model,)."""
    w1 = jnp.asarray(params['W1'], jnp.float32)   # (d_inner, d_model)
    w2 = jnp.asarray(params['W2'], jnp.float32)   # (d_model, d_inner)
    di, dm = w1.shape

    tm_max = max(8, (tm_max // 8) * 8)
    cap = _vmem_capacity_bytes()
    budget = int(0.80 * cap)

    def _fits(tdi):
        n_k = _round_up(di, tdi) // tdi
        wbuf = 1 if n_k == 1 else 2                 # resident weights -> single buffered
        weights = wbuf * 2 * dm * tdi * 2           # W1^T + W2^T slices, bf16
        io_bufs = 2 * (tm_max * dm * 4) * 2         # x + out blocks, double-buffered f32
        xin = tm_max * dm * 2                       # bf16 scratch
        hidden = tm_max * tdi * 6                   # hidden f32 + bf16 cast temp
        misc = (2 * tdi + 3 * dm) * 8
        return weights + io_bufs + xin + hidden + misc <= budget

    # Prefer the whole (padded) d_inner in one tile -> weights fetched from HBM exactly once.
    tdi = _round_up(di, 128)
    while tdi > 128 and not _fits(tdi):
        tdi = max(128, _round_up(tdi // 2, 128))
    dip = _round_up(di, tdi)

    # Zero-padding of d_inner is exact: relu(0)=0 and the matching zero rows of W2^T add nothing.
    return {
        'd_model': dm, 'd_inner': di, 'dip': dip, 'tdi': tdi,
        'tm_max': tm_max, 'pre_lnorm': pre_lnorm,
        'vmem_limit': int(0.85 * cap),
        'w1_t': jnp.pad(w1.T, ((0, 0), (0, dip - di))).astype(jnp.bfloat16),   # (dm, dip)
        'w2_t': jnp.pad(w2.T, ((0, dip - di), (0, 0))).astype(jnp.bfloat16),   # (dip, dm)
        'b1': jnp.pad(jnp.asarray(params['b1'], jnp.float32), (0, dip - di)).reshape(1, dip),
        'b2': jnp.asarray(params['b2'], jnp.float32).reshape(1, dm),
        'ln_g': jnp.asarray(params['ln_g'], jnp.float32).reshape(1, dm),
        'ln_b': jnp.asarray(params['ln_b'], jnp.float32).reshape(1, dm),
    }


def positionwise_ff(prepared, inp):
    """Apply the fused FFN kernel. inp: (..., d_model)."""
    p = prepared
    dm, dip, tdi = p['d_model'], p['dip'], p['tdi']

    orig_shape = inp.shape
    x2d = inp.reshape(-1, dm).astype(jnp.float32)
    M = x2d.shape[0]

    # Row tile: multiple of 8; keep >= 2 row tiles when possible so both v7x TCs get work.
    tm = min(p['tm_max'], _round_up(M, 8))
    Mp = _round_up(M, tm)
    if Mp // tm == 1 and M > 8:
        tm = _round_up(-(-M // 2), 8)
        Mp = _round_up(M, tm)
    if Mp != M:                       # skip the pad copy when already aligned
        x2d = jnp.pad(x2d, ((0, Mp - M), (0, 0)))

    n_m = Mp // tm
    n_k = dip // tdi
    resident = (n_k == 1)

    kernel = functools.partial(_ff_kernel, pre_lnorm=p['pre_lnorm'])

    def _run(single_buffer_weights):
        wkw = {'pipeline_mode': pl.Buffered(1)} if single_buffer_weights else {}
        grid_spec = pltpu.PrefetchScalarGridSpec(
            num_scalar_prefetch=0,
            grid=(n_m, n_k),
            in_specs=[
                pl.BlockSpec((tm, dm), lambda i, k: (i, 0)),          # x (resident over k)
                pl.BlockSpec((dm, tdi), lambda i, k: (0, k), **wkw),  # W1^T slice (resident if n_k==1)
                pl.BlockSpec((1, tdi), lambda i, k: (0, k)),          # b1 slice
                pl.BlockSpec((tdi, dm), lambda i, k: (k, 0), **wkw),  # W2^T slice (resident if n_k==1)
                pl.BlockSpec((1, dm), lambda i, k: (0, 0)),           # b2
                pl.BlockSpec((1, dm), lambda i, k: (0, 0)),           # ln gamma
                pl.BlockSpec((1, dm), lambda i, k: (0, 0)),           # ln beta
            ],
            out_specs=pl.BlockSpec((tm, dm), lambda i, k: (i, 0)),    # lane-dense f32 output
            scratch_shapes=[pltpu.VMEM((tm, dm), jnp.bfloat16)],      # hoisted LN/bf16(x)
        )
        return pl.pallas_call(
            kernel,
            out_shape=jax.ShapeDtypeStruct((Mp, dm), jnp.float32),
            grid_spec=grid_spec,
            compiler_params=pltpu.CompilerParams(
                dimension_semantics=("parallel", "arbitrary"),
                vmem_limit_bytes=p['vmem_limit'],
            ),
        )(x2d, p['w1_t'], p['b1'], p['w2_t'], p['b2'], p['ln_g'], p['ln_b'])

    try:
        out = _run(resident)
    except Exception:
        if not resident:
            raise
        out = _run(False)   # fallback if this JAX build rejects pl.Buffered(1)

    return out[:M].reshape(orig_shape).astype(inp.dtype)


# ----------------------------- pure-JAX reference -------------------------------

def reference(inp, params, pre_lnorm=False):
    x = inp.astype(jnp.float32)

    def core(z):
        h = jnp.maximum(z @ params['W1'].T + params['b1'], 0.0)
        return h @ params['W2'].T + params['b2']

    if pre_lnorm:
        return core(_layer_norm(x, params['ln_g'], params['ln_b'])) + x
    return _layer_norm(x + core(x), params['ln_g'], params['ln_b'])


# ----------------------------- main ---------------------------------------------

def _make_params(key, d_model, d_inner):
    ks = jax.random.split(key, 6)

    def init(k, shape, s=0.05):
        return (s * jax.random.normal(k, shape)).astype(jnp.float32)

    return {
        'W1':   init(ks[0], (d_inner, d_model)),
        'b1':   init(ks[1], (d_inner,), 0.01),
        'W2':   init(ks[2], (d_model, d_inner)),
        'b2':   init(ks[3], (d_model,), 0.01),
        'ln_g': jnp.ones((d_model,), jnp.float32) + init(ks[4], (d_model,), 0.01),
        'ln_b': init(ks[5], (d_model,), 0.01),
    }


if __name__ == "__main__":
    key = jax.random.PRNGKey(0)
    k_small, k_med, k_in1, k_in2 = jax.random.split(key, 4)

    # --- small shapes consistent with the module (qlen=8, bsz=2, d_model=32, d_inner=64) ---
    d_model, d_inner = 32, 64
    qlen, bsz = 8, 2
    params = _make_params(k_small, d_model, d_inner)
    inp = jax.random.normal(k_in1, (qlen, bsz, d_model), jnp.float32)

    for pre in (False, True):
        prepared = prepare_positionwise_ff(params, pre_lnorm=pre)
        out = jax.block_until_ready(positionwise_ff(prepared, inp))
        ref = jax.block_until_ready(reference(inp, params, pre_lnorm=pre))
        assert out.shape == (qlen, bsz, d_model)
        max_err = float(jnp.max(jnp.abs(out - ref)))
        # bf16 matmul operands with f32 accumulation -> loosened tolerance
        assert max_err < 2e-2, f"pre_lnorm={pre}: mismatch vs reference, max abs err = {max_err}"

    # --- medium check: multiple row tiles, row padding (M=300), resident weights ---
    d_model2, d_inner2 = 128, 512
    qlen2, bsz2 = 25, 12
    params2 = _make_params(k_med, d_model2, d_inner2)
    inp2 = jax.random.normal(k_in2, (qlen2, bsz2, d_model2), jnp.float32)

    prepared2 = prepare_positionwise_ff(params2, pre_lnorm=False)
    out2 = jax.block_until_ready(positionwise_ff(prepared2, inp2))
    ref2 = jax.block_until_ready(reference(inp2, params2, pre_lnorm=False))
    assert out2.shape == (qlen2, bsz2, d_model2)
    max_err2 = float(jnp.max(jnp.abs(out2 - ref2)))
    assert max_err2 < 5e-2, f"medium shape: mismatch vs reference, max abs err = {max_err2}"

    print("KERNEL_OK")
</pallas_src>

<mosaic_0001>
module attributes {stable_mosaic.version = 11 : i64} {
  func.func @_ff_kernel(%arg0: i32, %arg1: i32, %arg2: memref<8x32xf32, #tpu.memory_space<vmem>>, %arg3: memref<32x128xbf16, #tpu.memory_space<vmem>>, %arg4: memref<1x128xf32, #tpu.memory_space<vmem>>, %arg5: memref<128x32xbf16, #tpu.memory_space<vmem>>, %arg6: memref<1x32xf32, #tpu.memory_space<vmem>>, %arg7: memref<1x32xf32, #tpu.memory_space<vmem>>, %arg8: memref<1x32xf32, #tpu.memory_space<vmem>>, %arg9: memref<8x32xf32, #tpu.memory_space<vmem>>, %arg10: memref<8x32xbf16, #tpu.memory_space<vmem>>) attributes {dimension_semantics = [#tpu.dimension_semantics<parallel>, #tpu.dimension_semantics<arbitrary>], iteration_bounds = array<i64: 2, 1>, scalar_prefetch = 0 : i64, scratch_operands = 1 : i64, tpu.core_type = #tpu.core_type<tc>, window_params = [{transform_indices = @transform_0, window_bounds = array<i64: 8, 32>}, {pipeline_mode = #tpu.pipeline_mode<synchronous>, transform_indices = @transform_1, window_bounds = array<i64: 32, 128>}, {transform_indices = @transform_2, window_bounds = array<i64: 1, 128>}, {pipeline_mode = #tpu.pipeline_mode<synchronous>, transform_indices = @transform_3, window_bounds = array<i64: 128, 32>}, {pipeline_mode = #tpu.pipeline_mode<synchronous>, transform_indices = @transform_4, window_bounds = array<i64: 1, 32>}, {pipeline_mode = #tpu.pipeline_mode<synchronous>, transform_indices = @transform_5, window_bounds = array<i64: 1, 32>}, {pipeline_mode = #tpu.pipeline_mode<synchronous>, transform_indices = @transform_6, window_bounds = array<i64: 1, 32>}, {transform_indices = @transform_7, window_bounds = array<i64: 8, 32>}]} {
    %c0_i32 = arith.constant 0 : i32
    %0 = arith.cmpi eq, %arg1, %c0_i32 : i32
    %1 = arith.extui %0 : i1 to i32
    %c0_i32_0 = arith.constant 0 : i32
    %2 = arith.cmpi ne, %1, %c0_i32_0 : i32
    scf.if %2 {
      %c0_16 = arith.constant 0 : index
      %c0_17 = arith.constant 0 : index
      %20 = vector.load %arg2[%c0_16, %c0_17] : memref<8x32xf32, #tpu.memory_space<vmem>>, vector<8x32xf32>
      %21 = arith.truncf %20 : vector<8x32xf32> to vector<8x32xbf16>
      %c0_18 = arith.constant 0 : index
      %c0_19 = arith.constant 0 : index
      %22 = vector.load %arg10[%c0_18, %c0_19] : memref<8x32xbf16, #tpu.memory_space<vmem>>, vector<8x32xbf16>
      tpu.vector_store %arg10[%c0_18, %c0_19], %21 {strides = array<i32>} : memref<8x32xbf16, #tpu.memory_space<vmem>>, vector<8x32xbf16>,
      %cst_20 = arith.constant 0.000000e+00 : f32
      %23 = vector.broadcast %cst_20 : f32 to vector<8x32xf32>
      %c0_21 = arith.constant 0 : index
      %c0_22 = arith.constant 0 : index
      %24 = vector.load %arg9[%c0_21, %c0_22] : memref<8x32xf32, #tpu.memory_space<vmem>>, vector<8x32xf32>
      tpu.vector_store %arg9[%c0_21, %c0_22], %23 {strides = array<i32>} : memref<8x32xf32, #tpu.memory_space<vmem>>, vector<8x32xf32>,
    } else {
    }
    %c0 = arith.constant 0 : index
    %c0_1 = arith.constant 0 : index
    %3 = vector.load %arg10[%c0, %c0_1] : memref<8x32xbf16, #tpu.memory_space<vmem>>, vector<8x32xbf16>
    %c0_2 = arith.constant 0 : index
    %c0_3 = arith.constant 0 : index
    %4 = vector.load %arg3[%c0_2, %c0_3] : memref<32x128xbf16, #tpu.memory_space<vmem>>, vector<32x128xbf16>
    %cst = arith.constant dense<0.000000e+00> : vector<8x128xf32>
    %5 = tpu.matmul %3, %4, %cst {dimension_numbers = #tpu.dot_dimension_numbers<[1], [0], [0], [1], [0, 0, 1, 1], [], []>} : vector<8x32xbf16>, vector<32x128xbf16>, vector<8x128xf32> -> vector<8x128xf32>
    %c0_4 = arith.constant 0 : index
    %c0_5 = arith.constant 0 : index
    %6 = vector.load %arg4[%c0_4, %c0_5] : memref<1x128xf32, #tpu.memory_space<vmem>>, vector<1x128xf32>
    %7 = vector.broadcast %6 : vector<1x128xf32> to vector<8x128xf32>
    %8 = arith.addf %5, %7 : vector<8x128xf32>
    %cst_6 = arith.constant 0.000000e+00 : f32
    %9 = vector.broadcast %cst_6 : f32 to vector<8x128xf32>
    %10 = arith.maximumf %8, %9 : vector<8x128xf32>
    %c0_7 = arith.constant 0 : index
    %c0_8 = arith.constant 0 : index
    %11 = vector.load %arg9[%c0_7, %c0_8] : memref<8x32xf32, #tpu.memory_space<vmem>>, vector<8x32xf32>
    %12 = arith.truncf %10 : vector<8x128xf32> to vector<8x128xbf16>
    %c0_9 = arith.constant 0 : index
    %c0_10 = arith.constant 0 : index
    %13 = vector.load %arg5[%c0_9, %c0_10] : memref<128x32xbf16, #tpu.memory_space<vmem>>, vector<128x32xbf16>
    %cst_11 = arith.constant dense<0.000000e+00> : vector<8x32xf32>
    %14 = tpu.matmul %12, %13, %cst_11 {dimension_numbers = #tpu.dot_dimension_numbers<[1], [0], [0], [1], [0, 0, 1, 1], [], []>} : vector<8x128xbf16>, vector<128x32xbf16>, vector<8x32xf32> -> vector<8x32xf32>
    %15 = arith.addf %11, %14 : vector<8x32xf32>
    %c0_12 = arith.constant 0 : index
    %c0_13 = arith.constant 0 : index
    %16 = vector.load %arg9[%c0_12, %c0_13] : memref<8x32xf32, #tpu.memory_space<vmem>>, vector<8x32xf32>
    tpu.vector_store %arg9[%c0_12, %c0_13], %15 {strides = array<i32>} : memref<8x32xf32, #tpu.memory_space<vmem>>, vector<8x32xf32>,
    %c0_i32_14 = arith.constant 0 : i32
    %17 = arith.cmpi eq, %arg1, %c0_i32_14 : i32
    %18 = arith.extui %17 : i1 to i32
    %c0_i32_15 = arith.constant 0 : i32
    %19 = arith.cmpi ne, %18, %c0_i32_15 : i32
    scf.if %19 {
      %c0_16 = arith.constant 0 : index
      %c0_17 = arith.constant 0 : index
      %20 = vector.load %arg9[%c0_16, %c0_17] : memref<8x32xf32, #tpu.memory_space<vmem>>, vector<8x32xf32>
      %c0_18 = arith.constant 0 : index
      %c0_19 = arith.constant 0 : index
      %21 = vector.load %arg6[%c0_18, %c0_19] : memref<1x32xf32, #tpu.memory_space<vmem>>, vector<1x32xf32>
      %22 = vector.broadcast %21 : vector<1x32xf32> to vector<8x32xf32>
      %23 = arith.addf %20, %22 : vector<8x32xf32>
      %c0_20 = arith.constant 0 : index
      %c0_21 = arith.constant 0 : index
      %24 = vector.load %arg2[%c0_20, %c0_21] : memref<8x32xf32, #tpu.memory_space<vmem>>, vector<8x32xf32>
      %25 = arith.addf %24, %23 : vector<8x32xf32>
      %c0_22 = arith.constant 0 : index
      %c0_23 = arith.constant 0 : index
      %26 = vector.load %arg7[%c0_22, %c0_23] : memref<1x32xf32, #tpu.memory_space<vmem>>, vector<1x32xf32>
      %c0_24 = arith.constant 0 : index
      %c0_25 = arith.constant 0 : index
      %27 = vector.load %arg8[%c0_24, %c0_25] : memref<1x32xf32, #tpu.memory_space<vmem>>, vector<1x32xf32>
      %cst_26 = arith.constant dense<0.000000e+00> : vector<8xf32>
      %28 = vector.multi_reduction <add>, %25, %cst_26 [1] : vector<8x32xf32> to vector<8xf32>
      %29 = vector.shape_cast %28 : vector<8xf32> to vector<8x1xf32>
      %cst_27 = arith.constant 3.200000e+01 : f32
      %30 = vector.broadcast %cst_27 : f32 to vector<8x1xf32>
      %31 = arith.divf %29, %30 : vector<8x1xf32>
      %32 = vector.broadcast %31 : vector<8x1xf32> to vector<8x32xf32>
      %33 = arith.subf %25, %32 : vector<8x32xf32>
      %34 = arith.mulf %33, %33 : vector<8x32xf32>
      %cst_28 = arith.constant dense<0.000000e+00> : vector<8xf32>
      %35 = vector.multi_reduction <add>, %34, %cst_28 [1] : vector<8x32xf32> to vector<8xf32>
      %36 = vector.shape_cast %35 : vector<8xf32> to vector<8x1xf32>
      %cst_29 = arith.constant 3.200000e+01 : f32
      %37 = vector.broadcast %cst_29 : f32 to vector<8x1xf32>
      %38 = arith.divf %36, %37 : vector<8x1xf32>
      %39 = vector.broadcast %31 : vector<8x1xf32> to vector<8x32xf32>
      %40 = arith.subf %25, %39 : vector<8x32xf32>
      %cst_30 = arith.constant 9.99999974E-6 : f32
      %41 = vector.broadcast %cst_30 : f32 to vector<8x1xf32>
      %42 = arith.addf %38, %41 : vector<8x1xf32>
      %43 = math.rsqrt %42 : vector<8x1xf32>
      %44 = vector.broadcast %43 : vector<8x1xf32> to vector<8x32xf32>
      %45 = arith.mulf %40, %44 : vector<8x32xf32>
      %46 = vector.broadcast %26 : vector<1x32xf32> to vector<8x32xf32>
      %47 = arith.mulf %45, %46 : vector<8x32xf32>
      %48 = vector.broadcast %27 : vector<1x32xf32> to vector<8x32xf32>
      %49 = arith.addf %47, %48 : vector<8x32xf32>
      %c0_31 = arith.constant 0 : index
      %c0_32 = arith.constant 0 : index
      %50 = vector.load %arg9[%c0_31, %c0_32] : memref<8x32xf32, #tpu.memory_space<vmem>>, vector<8x32xf32>
      tpu.vector_store %arg9[%c0_31, %c0_32], %49 {strides = array<i32>} : memref<8x32xf32, #tpu.memory_space<vmem>>, vector<8x32xf32>,
    } else {
    }
    return
  }
  func.func @transform_0(%arg0: i32, %arg1: i32) -> (i32, i32) {
    %c0_i32 = arith.constant 0 : i32
    %c0_i32_0 = arith.constant 0 : i32
    return %arg0, %c0_i32 : i32, i32
  }
  func.func @transform_1(%arg0: i32, %arg1: i32) -> (i32, i32) {
    %c0_i32 = arith.constant 0 : i32
    %c0_i32_0 = arith.constant 0 : i32
    return %c0_i32, %arg1 : i32, i32
  }
  func.func @transform_2(%arg0: i32, %arg1: i32) -> (i32, i32) {
    %c0_i32 = arith.constant 0 : i32
    %c0_i32_0 = arith.constant 0 : i32
    return %c0_i32, %arg1 : i32, i32
  }
  func.func @transform_3(%arg0: i32, %arg1: i32) -> (i32, i32) {
    %c0_i32 = arith.constant 0 : i32
    %c0_i32_0 = arith.constant 0 : i32
    return %arg1, %c0_i32 : i32, i32
  }
  func.func @transform_4(%arg0: i32, %arg1: i32) -> (i32, i32) {
    %c0_i32 = arith.constant 0 : i32
    %c0_i32_0 = arith.constant 0 : i32
    %c0_i32_1 = arith.constant 0 : i32
    return %c0_i32, %c0_i32_0 : i32, i32
  }
  func.func @transform_5(%arg0: i32, %arg1: i32) -> (i32, i32) {
    %c0_i32 = arith.constant 0 : i32
    %c0_i32_0 = arith.constant 0 : i32
    %c0_i32_1 = arith.constant 0 : i32
    return %c0_i32, %c0_i32_0 : i32, i32
  }
  func.func @transform_6(%arg0: i32, %arg1: i32) -> (i32, i32) {
    %c0_i32 = arith.constant 0 : i32
    %c0_i32_0 = arith.constant 0 : i32
    %c0_i32_1 = arith.constant 0 : i32
    return %c0_i32, %c0_i32_0 : i32, i32
  }
  func.func @transform_7(%arg0: i32, %arg1: i32) -> (i32, i32) {
    %c0_i32 = arith.constant 0 : i32
    %c0_i32_0 = arith.constant 0 : i32
    return %arg0, %c0_i32 : i32, i32
  }
}

module attributes {stable_mosaic.version = 11 : i64} {
  func.func @_ff_kernel(%arg0: i32, %arg1: i32, %arg2: memref<8x32xf32, #tpu.memory_space<vmem>>, %arg3: memref<32x128xbf16, #tpu.memory_space<vmem>>, %arg4: memref<1x128xf32, #tpu.memory_space<vmem>>, %arg5: memref<128x32xbf16, #tpu.memory_space<vmem>>, %arg6: memref<1x32xf32, #tpu.memory_space<vmem>>, %arg7: memref<1x32xf32, #tpu.memory_space<vmem>>, %arg8: memref<1x32xf32, #tpu.memory_space<vmem>>, %arg9: memref<8x32xf32, #tpu.memory_space<vmem>>, %arg10: memref<8x32xbf16, #tpu.memory_space<vmem>>) attributes {dimension_semantics = [#tpu.dimension_semantics<parallel>, #tpu.dimension_semantics<arbitrary>], iteration_bounds = array<i64: 2, 1>, scalar_prefetch = 0 : i64, scratch_operands = 1 : i64, tpu.core_type = #tpu.core_type<tc>, window_params = [{transform_indices = @transform_0, window_bounds = array<i64: 8, 32>}, {transform_indices = @transform_1, window_bounds = array<i64: 32, 128>}, {transform_indices = @transform_2, window_bounds = array<i64: 1, 128>}, {transform_indices = @transform_3, window_bounds = array<i64: 128, 32>}, {pipeline_mode = #tpu.pipeline_mode<synchronous>, transform_indices = @transform_4, window_bounds = array<i64: 1, 32>}, {pipeline_mode = #tpu.pipeline_mode<synchronous>, transform_indices = @transform_5, window_bounds = array<i64: 1, 32>}, {pipeline_mode = #tpu.pipeline_mode<synchronous>, transform_indices = @transform_6, window_bounds = array<i64: 1, 32>}, {transform_indices = @transform_7, window_bounds = array<i64: 8, 32>}]} {
    %c0_i32 = arith.constant 0 : i32
    %0 = arith.cmpi eq, %arg1, %c0_i32 : i32
    %1 = arith.extui %0 : i1 to i32
    %c0_i32_0 = arith.constant 0 : i32
    %2 = arith.cmpi ne, %1, %c0_i32_0 : i32
    scf.if %2 {
      %c0_16 = arith.constant 0 : index
      %c0_17 = arith.constant 0 : index
      %20 = vector.load %arg2[%c0_16, %c0_17] : memref<8x32xf32, #tpu.memory_space<vmem>>, vector<8x32xf32>
      %21 = arith.truncf %20 : vector<8x32xf32> to vector<8x32xbf16>
      %c0_18 = arith.constant 0 : index
      %c0_19 = arith.constant 0 : index
      %22 = vector.load %arg10[%c0_18, %c0_19] : memref<8x32xbf16, #tpu.memory_space<vmem>>, vector<8x32xbf16>
      tpu.vector_store %arg10[%c0_18, %c0_19], %21 {strides = array<i32>} : memref<8x32xbf16, #tpu.memory_space<vmem>>, vector<8x32xbf16>,
      %cst_20 = arith.constant 0.000000e+00 : f32
      %23 = vector.broadcast %cst_20 : f32 to vector<8x32xf32>
      %c0_21 = arith.constant 0 : index
      %c0_22 = arith.constant 0 : index
      %24 = vector.load %arg9[%c0_21, %c0_22] : memref<8x32xf32, #tpu.memory_space<vmem>>, vector<8x32xf32>
      tpu.vector_store %arg9[%c0_21, %c0_22], %23 {strides = array<i32>} : memref<8x32xf32, #tpu.memory_space<vmem>>, vector<8x32xf32>,
    } else {
    }
    %c0 = arith.constant 0 : index
    %c0_1 = arith.constant 0 : index
    %3 = vector.load %arg10[%c0, %c0_1] : memref<8x32xbf16, #tpu.memory_space<vmem>>, vector<8x32xbf16>
    %c0_2 = arith.constant 0 : index
    %c0_3 = arith.constant 0 : index
    %4 = vector.load %arg3[%c0_2, %c0_3] : memref<32x128xbf16, #tpu.memory_space<vmem>>, vector<32x128xbf16>
    %cst = arith.constant dense<0.000000e+00> : vector<8x128xf32>
    %5 = tpu.matmul %3, %4, %cst {dimension_numbers = #tpu.dot_dimension_numbers<[1], [0], [0], [1], [0, 0, 1, 1], [], []>} : vector<8x32xbf16>, vector<32x128xbf16>, vector<8x128xf32> -> vector<8x128xf32>
    %c0_4 = arith.constant 0 : index
    %c0_5 = arith.constant 0 : index
    %6 = vector.load %arg4[%c0_4, %c0_5] : memref<1x128xf32, #tpu.memory_space<vmem>>, vector<1x128xf32>
    %7 = vector.broadcast %6 : vector<1x128xf32> to vector<8x128xf32>
    %8 = arith.addf %5, %7 : vector<8x128xf32>
    %cst_6 = arith.constant 0.000000e+00 : f32
    %9 = vector.broadcast %cst_6 : f32 to vector<8x128xf32>
    %10 = arith.maximumf %8, %9 : vector<8x128xf32>
    %c0_7 = arith.constant 0 : index
    %c0_8 = arith.constant 0 : index
    %11 = vector.load %arg9[%c0_7, %c0_8] : memref<8x32xf32, #tpu.memory_space<vmem>>, vector<8x32xf32>
    %12 = arith.truncf %10 : vector<8x128xf32> to vector<8x128xbf16>
    %c0_9 = arith.constant 0 : index
    %c0_10 = arith.constant 0 : index
    %13 = vector.load %arg5[%c0_9, %c0_10] : memref<128x32xbf16, #tpu.memory_space<vmem>>, vector<128x32xbf16>
    %cst_11 = arith.constant dense<0.000000e+00> : vector<8x32xf32>
    %14 = tpu.matmul %12, %13, %cst_11 {dimension_numbers = #tpu.dot_dimension_numbers<[1], [0], [0], [1], [0, 0, 1, 1], [], []>} : vector<8x128xbf16>, vector<128x32xbf16>, vector<8x32xf32> -> vector<8x32xf32>
    %15 = arith.addf %11, %14 : vector<8x32xf32>
    %c0_12 = arith.constant 0 : index
    %c0_13 = arith.constant 0 : index
    %16 = vector.load %arg9[%c0_12, %c0_13] : memref<8x32xf32, #tpu.memory_space<vmem>>, vector<8x32xf32>
    tpu.vector_store %arg9[%c0_12, %c0_13], %15 {strides = array<i32>} : memref<8x32xf32, #tpu.memory_space<vmem>>, vector<8x32xf32>,
    %c0_i32_14 = arith.constant 0 : i32
    %17 = arith.cmpi eq, %arg1, %c0_i32_14 : i32
    %18 = arith.extui %17 : i1 to i32
    %c0_i32_15 = arith.constant 0 : i32
    %19 = arith.cmpi ne, %18, %c0_i32_15 : i32
    scf.if %19 {
      %c0_16 = arith.constant 0 : index
      %c0_17 = arith.constant 0 : index
      %20 = vector.load %arg9[%c0_16, %c0_17] : memref<8x32xf32, #tpu.memory_space<vmem>>, vector<8x32xf32>
      %c0_18 = arith.constant 0 : index
      %c0_19 = arith.constant 0 : index
      %21 = vector.load %arg6[%c0_18, %c0_19] : memref<1x32xf32, #tpu.memory_space<vmem>>, vector<1x32xf32>
      %22 = vector.broadcast %21 : vector<1x32xf32> to vector<8x32xf32>
      %23 = arith.addf %20, %22 : vector<8x32xf32>
      %c0_20 = arith.constant 0 : index
      %c0_21 = arith.constant 0 : index
      %24 = vector.load %arg2[%c0_20, %c0_21] : memref<8x32xf32, #tpu.memory_space<vmem>>, vector<8x32xf32>
      %25 = arith.addf %24, %23 : vector<8x32xf32>
      %c0_22 = arith.constant 0 : index
      %c0_23 = arith.constant 0 : index
      %26 = vector.load %arg7[%c0_22, %c0_23] : memref<1x32xf32, #tpu.memory_space<vmem>>, vector<1x32xf32>
      %c0_24 = arith.constant 0 : index
      %c0_25 = arith.constant 0 : index
      %27 = vector.load %arg8[%c0_24, %c0_25] : memref<1x32xf32, #tpu.memory_space<vmem>>, vector<1x32xf32>
      %cst_26 = arith.constant dense<0.000000e+00> : vector<8xf32>
      %28 = vector.multi_reduction <add>, %25, %cst_26 [1] : vector<8x32xf32> to vector<8xf32>
      %29 = vector.shape_cast %28 : vector<8xf32> to vector<8x1xf32>
      %cst_27 = arith.constant 3.200000e+01 : f32
      %30 = vector.broadcast %cst_27 : f32 to vector<8x1xf32>
      %31 = arith.divf %29, %30 : vector<8x1xf32>
      %32 = vector.broadcast %31 : vector<8x1xf32> to vector<8x32xf32>
      %33 = arith.subf %25, %32 : vector<8x32xf32>
      %34 = arith.mulf %33, %33 : vector<8x32xf32>
      %cst_28 = arith.constant dense<0.000000e+00> : vector<8xf32>
      %35 = vector.multi_reduction <add>, %34, %cst_28 [1] : vector<8x32xf32> to vector<8xf32>
      %36 = vector.shape_cast %35 : vector<8xf32> to vector<8x1xf32>
      %cst_29 = arith.constant 3.200000e+01 : f32
      %37 = vector.broadcast %cst_29 : f32 to vector<8x1xf32>
      %38 = arith.divf %36, %37 : vector<8x1xf32>
      %39 = vector.broadcast %31 : vector<8x1xf32> to vector<8x32xf32>
      %40 = arith.subf %25, %39 : vector<8x32xf32>
      %cst_30 = arith.constant 9.99999974E-6 : f32
      %41 = vector.broadcast %cst_30 : f32 to vector<8x1xf32>
      %42 = arith.addf %38, %41 : vector<8x1xf32>
      %43 = math.rsqrt %42 : vector<8x1xf32>
      %44 = vector.broadcast %43 : vector<8x1xf32> to vector<8x32xf32>
      %45 = arith.mulf %40, %44 : vector<8x32xf32>
      %46 = vector.broadcast %26 : vector<1x32xf32> to vector<8x32xf32>
      %47 = arith.mulf %45, %46 : vector<8x32xf32>
      %48 = vector.broadcast %27 : vector<1x32xf32> to vector<8x32xf32>
      %49 = arith.addf %47, %48 : vector<8x32xf32>
      %c0_31 = arith.constant 0 : index
      %c0_32 = arith.constant 0 : index
      %50 = vector.load %arg9[%c0_31, %c0_32] : memref<8x32xf32, #tpu.memory_space<vmem>>, vector<8x32xf32>
      tpu.vector_store %arg9[%c0_31, %c0_32], %49 {strides = array<i32>} : memref<8x32xf32, #tpu.memory_space<vmem>>, vector<8x32xf32>,
    } else {
    }
    return
  }
  func.func @transform_0(%arg0: i32, %arg1: i32) -> (i32, i32) {
    %c0_i32 = arith.constant 0 : i32
    %c0_i32_0 = arith.constant 0 : i32
    return %arg0, %c0_i32 : i32, i32
  }
  func.func @transform_1(%arg0: i32, %arg1: i32) -> (i32, i32) {
    %c0_i32 = arith.constant 0 : i32
    %c0_i32_0 = arith.constant 0 : i32
    return %c0_i32, %arg1 : i32, i32
  }
  func.func @transform_2(%arg0: i32, %arg1: i32) -> (i32, i32) {
    %c0_i32 = arith.constant 0 : i32
    %c0_i32_0 = arith.constant 0 : i32
    return %c0_i32, %arg1 : i32, i32
  }
  func.func @transform_3(%arg0: i32, %arg1: i32) -> (i32, i32) {
    %c0_i32 = arith.constant 0 : i32
    %c0_i32_0 = arith.constant 0 : i32
    return %arg1, %c0_i32 : i32, i32
  }
  func.func @transform_4(%arg0: i32, %arg1: i32) -> (i32, i32) {
    %c0_i32 = arith.constant 0 : i32
    %c0_i32_0 = arith.constant 0 : i32
    %c0_i32_1 = arith.constant 0 : i32
    return %c0_i32, %c0_i32_0 : i32, i32
  }
  func.func @transform_5(%arg0: i32, %arg1: i32) -> (i32, i32) {
    %c0_i32 = arith.constant 0 : i32
    %c0_i32_0 = arith.constant 0 : i32
    %c0_i32_1 = arith.constant 0 : i32
    return %c0_i32, %c0_i32_0 : i32, i32
  }
  func.func @transform_6(%arg0: i32, %arg1: i32) -> (i32, i32) {
    %c0_i32 = arith.constant 0 : i32
    %c0_i32_0 = arith.constant 0 : i32
    %c0_i32_1 = arith.constant 0 : i32
    return %c0_i32, %c0_i32_0 : i32, i32
  }
  func.func @transform_7(%arg0: i32, %arg1: i32) -> (i32, i32) {
    %c0_i32 = arith.constant 0 : i32
    %c0_i32_0 = arith.constant 0 : i32
    return %arg0, %c0_i32 : i32, i32
  }
}

</mosaic_0001>

<bundles_post_ra>
// kernel: tpu_custom_call.1
= control target key start
LH: loop header
LB: loop body
LE: loop exit
PB: predicated region body
PF: predicated region fallthrough
CT: control target
= control target key end

     0   :  { %12 = vsyncpa [#allocation4], 0  ;;  %s1128_s0 = inlined_call_operand.vmem [shape: f32[16,32], index: 0, kind: input, shape index: {}]   ;;  %s1129_s1 = inlined_call_operand.vmem [shape: bf16[32,128], index: 1, kind: input, shape index: {}]   ;;  %s1130_s2 = inlined_call_operand.vmem [shape: f32[1,128], index: 2, kind: input, shape index: {}]   ;;  %s1131_s3 = inlined_call_operand.vmem [shape: bf16[128,32], index: 3, kind: input, shape index: {}]   ;;  %s1132_s4 = inlined_call_operand.vmem [shape: f32[1,32], index: 4, kind: input, shape index: {}]   ;;  %s1133_s5 = inlined_call_operand.vmem [shape: f32[1,32], index: 5, kind: input, shape index: {}]   ;;  %s1134_s6 = inlined_call_operand.vmem [shape: f32[1,32], index: 6, kind: input, shape index: {}]   ;;  %s1135_s7 = inlined_call_operand.hbm [shape: f32[16,32], index: 7, kind: output, shape index: {}]  }
   0x1   :  { %14 = vsyncpa [#allocation4 + $0x1], 0  ;;  %s956_s24 = smov 0   ;;  %s958_s25 = smov 0  }
   0x2   :  { %s960_s26 = smov 0   ;;  %s962_s27 = smov 0  }
   0x3   :  { %s964_s28 = smov 0   ;;  %s966_s29 = smov 0  }
   0x4 LB: > { %s695_s30 = sadd.s32 4294967295, %s911_s29   ;;  %s696_s8 = sadd.s32 4294967294, %s911_s29   ;;  %s911_s29 = sphi %s966_s29, %s20_s29   ;;  %s907_s28 = sphi %s964_s28, %s1142_s28   ;;  %s903_s27 = sphi %s962_s27, %s1141_s27   ;;  %s899_s26 = sphi %s960_s26, %s1140_s26   ;;  %s895_s25 = sphi %s958_s25, %s1139_s25   ;;  %s891_s24 = sphi %s956_s24, %s1138_s24  }
   0x5   : > { %s32_s9 = sadd.s32 1, %s907_s28  ;;  %s206_s10 = sadd.s32 1, %s899_s26 }
   0x6   : > { %p34_p0 = scmp.ge.s32.totalorder %s32_s9, 2  ;;  %p216_p1 = scmp.ne.s32.totalorder %s899_s26, %s895_s25 }
   0x7   : > { %p217_p2 = scmp.eq.s32.totalorder %s695_s30, 1  ;;  %p222_p3 = scmp.ne.s32.totalorder %s895_s25, %s891_s24 }
   0x8   : > { %s1144_s9 = smov (%p34_p0, %s32_s9), 0  ;;  %p223_p5 = scmp.eq.s32.totalorder %s696_s8, 1 }
   0x9   : > { %p996_p4 = por %p217_p2, %p216_p1  ;;  %s203_s12 = ssub.s32 %s907_s28, %s1144_s9 }
   0xa   : > { %p702_p6 = scmp.ge.s32.totalorder %s911_s29, 1  ;;  %p204_p7 = scmp.eq.s32.totalorder %s203_s12, 0 }
   0xb   : > { %p1003_p8 = por %p223_p5, %p222_p3  ;;  %p279_p9 = scmp.lt.s32.totalorder %s911_s29, 3 }
   0xc   : > { %s1009_s14 = scalar_select %p204_p7, %s899_s26, %s206_s10  }
   0xd   : > { %p280_p10 = pnand %p702_p6, %p279_p9 }
   0xe   : > { %v821_v0 = vld [vmem:[%s1129_s1] sm:$0xff] (!%p280_p10)   ;;  %v913_v1 = vmov (!%p280_p10), 0.0   ;;  %v822_v2 = vld [vmem:[%s1129_s1 + $0x8] sm:$0xff] (!%p280_p10)   ;;  %vm914_vm0 = vmmov (!%p280_p10), 0   ;;  %p322_p11 = scmp.lt.s32.totalorder (!%p280_p10), %s903_s27, 1  ;;  %vm346_vm1 = vcmask (!%p280_p10), 257024  }
   0xf   : > { %283 = sbr.rel (%p280_p10) target bundleno = 808 (0x328), region = 48  ;;  %736 = vmatprep.subr.bf16.mxu0 (!%p280_p10), %v913_v1  ;;  %744 = vmatprep.subr.bf16.mxu1 (!%p280_p10), %v913_v1  ;;  %v823_v3 = vld [vmem:[%s1131_s3] sm:$0xff] (!%p280_p10)   ;;  %v824_v4 = vld [vmem:[%s1131_s3 + $0x8] sm:$0xff] (!%p280_p10)   ;;  %v825_v6 = vld [vmem:[%s1131_s3 + $0x10] sm:$0xff] (!%p280_p10)   ;;  %vm348_vm2 = vcmask (!%p280_p10), 261120   ;;  %s721_s8 = sshll.u32 (!%p280_p10), %s903_s27, 7 }
  0x10   : > { %737 = vmatpush3.bf16.msra.mxu0 (!%p280_p10), %v821_v0  ;;  %740 = vmatprep.mubr.msk.bf16.mxu0 (!%p280_p10), %vm914_vm0, %v913_v1  ;;  %v826_v8 = vld [vmem:[%s1131_s3 + $0x18] sm:$0xff] (!%p280_p10)   ;;  %v827_v9 = vld [vmem:[%s1131_s3 + $0x20] sm:$0xff] (!%p280_p10)   ;;  %v828_v11 = vld [vmem:[%s1131_s3 + $0x28] sm:$0xff] (!%p280_p10)   ;;  %s1077_s18 = scalar_lea.hbm (!%p280_p10), %s1135_s7, %s721_s8 }
  0x11   : > { %738 = vmatprep.subr.bf16.mxu0 (!%p280_p10), %v913_v1  ;;  %760 = vmatprep.mubr.msk.bf16.mxu1 (!%p280_p10), %vm914_vm0, %v913_v1  ;;  %v829_v12 = vld [vmem:[%s1131_s3 + $0x30] sm:$0xff] (!%p280_p10)   ;;  %v830_v13 = vld [vmem:[%s1131_s3 + $0x38] sm:$0xff] (!%p280_p10)   ;;  %v705_v14 = vld [vmem:[%s1130_s2] ss:$0 sm:$0xff] (!%p280_p10) }
  0x12   : > { %745 = vmatpush3.bf16.msra.mxu1 (!%p280_p10), %v823_v3  ;;  %v717_v28 = vld [vmem:[%s1132_s4] ss:$0 sm:$0xff] (!%p280_p10) }
  0x13   : > { %746 = vmatprep.subr.bf16.mxu1 (!%p280_p10), %v913_v1  ;;  %v718_v42 = vld [vmem:[%s1133_s5] ss:$0 sm:$0xff] (!%p280_p10) }
  0x14   : > { %739 = vmatpush3.bf16.msra.mxu0 (!%p280_p10), %v822_v2  ;;  %v719_v44 = vld [vmem:[%s1134_s6] ss:$0 sm:$0xff] (!%p280_p10) }
  0x16   : > { %s323_s21 = scalar_select %p322_p11, %s903_s27, 1  ;;  %747 = vmatpush3.bf16.msra.mxu1 %v824_v4 }
  0x17   : > { %748 = vmatprep.subr.bf16.mxu1 %v913_v1  ;;  %s915_s27 = smov [#allocation3]  }
  0x18   : > { %s704_s30 = sshll.u32 %s323_s21, 3  ;;  %s837_s21 = sshll.u32 %s915_s27, 4  ;;  %s838_s21 = int_to_ptr.vmem [resolvable:$false] %s837_s21 }
  0x19   : > { %s325_s12 = scalar_lea.vmem %s1128_s0, %s704_s30  ;;  %s839_s22 = scalar_lea.vmem %s838_s21, 256 }
  0x1a   : > { %v344_v5 = vld [vmem:[%s325_s12] sm:$0xff]  ;;  %749 = vmatpush3.bf16.msra.mxu1 %v825_v6  ;;  %s319_s12 = sand.u32 1, %s895_s25  }
  0x1b   : > { %v345_v7 = vpack.c.bf16 %v344_v5, %v344_v5  ;;  %750 = vmatprep.subr.bf16.mxu1 %v913_v1  ;;  %s703_s15 = sshll.u32 %s319_s12, 3  ;;  %s573_s19 = scalar_lea.sflag [#allocation4], %s319_s12 }
  0x1c   : > { %s1050_s16 = scalar_lea.vmem [#allocation3], %s703_s15 }
  0x1d   : > { %347 = vst.msk [vmem:[#allocation2] sm:$0xf] %vm346_vm1, %v345_v7  ;;  %s586_s10 = sshll.u32 %s1050_s16, 4  ;;  %s1079_s10 = int_to_ptr.vmem [resolvable:$true] %s586_s10 }
  0x1e   : > { %751 = vmatpush3.bf16.msra.mxu1 %v826_v8  ;;  %349 = vst.msk [vmem:[%s1050_s16] sm:$0xff] %vm348_vm2, %v913_v1  ;;  %s833_s20 = scalar_lea.vmem %s1079_s10, 128  ;;  %p840_p1 = scmp.lt.s32.totalorder %s1079_s10, %s838_s21 }
  0x1f   : > { %752 = vmatprep.subr.bf16.mxu1 %v913_v1  ;;  %p834_p12 = scmp.ne.s32.totalorder %s1079_s10, %s833_s20  ;;  %p841_p2 = scmp.lt.s32.totalorder %s839_s22, %s833_s20 }
  0x21   : > { %p835_p13 = pnand %p834_p12, %p996_p4  ;;  %p842_p3 = por %p841_p2, %p840_p1 }
  0x22   : > { %753 = vmatpush3.bf16.msra.mxu1 %v827_v9 }
  0x23   : > { %754 = vmatprep.subr.bf16.mxu1 %v913_v1  ;;  %p836_p0 = pneg %p835_p13 }
  0x24   : > { %v350_v10 = vld [vmem:[#allocation2] sm:$0xf] }
  0x25   : > { %741 = vmatmul.mubr.msk.bf16.vlgmr.msra.gmra.mrb[0].mxu0 %vm348_vm2, %v350_v10  ;;  %v419_v22 = vld [vmem:[%s1050_s16] sm:$0xff]  ;;  %p843_p5 = pnand %p842_p3, %p836_p0 }
  0x26   : > { %755 = vmatpush3.bf16.msra.mxu1 %v828_v11 }
  0x27   : > { %756 = vmatprep.subr.bf16.mxu1 %v913_v1 }
  0x2a   : > { %757 = vmatpush3.bf16.msra.mxu1 %v829_v12 }
  0x2b   : > { %758 = vmatprep.subr.bf16.mxu1 %v913_v1 }
  0x2e   : > { %759 = vmatpush3.bf16.msra.mxu1 %v830_v13 }
  0xf8   : > { %v412_v15 = vpop.f32.mrb[0].mxu0 }
  0xf9   : > { %v413_v16 = vadd.f32 %v705_v14, %v412_v15  ;;  %v742_v17 = vpop.f32.mrb[1].mxu0 }
  0xfa   : > { %v415_v18 = vpop.f32.mrb[2].mxu0 }
  0xfb   : > { %v418_v19 = vmax.f32 %v413_v16, 0.0  ;;  %v743_v20 = vpop.f32.mrb[3].mxu0 }
  0xfd   : > { %v420_v21 = vpack.c.bf16 %v418_v19, %v418_v19 }
  0xff   : > { %761 = vmatmul.mubr.bf16.vlgmr.msra.gmra.mrb[0].mxu1 %v420_v21 }
 0x1d2   : > { %v519_v23 = vpop.f32.mrb[0].mxu1 }
 0x1d3   : > { %v525_v24 = vadd.f32 %v519_v23, %v419_v22  ;;  %v762_v25 = vpop.f32.mrb[1].mxu1 }
 0x1d4   : > { %v522_v26 = vpop.f32.mrb[2].mxu1 }
 0x1d5   : > { %526 = vst.msk [vmem:[%s1050_s16] sm:$0xff] %vm348_vm2, %v525_v24  ;;  %v763_v27 = vpop.f32.mrb[3].mxu1 }
 0x1dc   : > { %v530_v29 = vld [vmem:[%s1050_s16] sm:$0xff] }
 0x1dd   : > { %v538_v30 = vadd.f32 %v717_v28, %v530_v29 }
 0x1df   : > { %v540_v31 = vadd.f32 %v538_v30, %v344_v5 }
 0x1e1   : > { %v543_v32 = vsel %vm348_vm2, %v540_v31, 0.0 }
 0x1e2   : > { %544 = vadd.xlane.f32.xlu0 %v543_v32 }
 0x26f   : > { %v545_v33 = vpop.xlane.xlu0 %544 }
 0x270   : > { %v547_v34 = vmul.f32 0.03125, %v545_v33 }
 0x272   : > { %v548_v35 = vsub.f32 %v540_v31, %v547_v34 }
 0x274   : > { %v549_v36 = vmul.f32 %v548_v35, %v548_v35 }
 0x276   : > { %v550_v37 = vsel %vm348_vm2, %v549_v36, 0.0 }
 0x277   : > { %551 = vadd.xlane.f32.xlu0 %v550_v37 }
 0x304   : > { %v552_v38 = vpop.xlane.xlu0 %551 }
 0x305   : > { %v553_v39 = vmul.f32 0.03125, %v552_v38 }
 0x307   : > { %v554_v40 = vadd.f32 1e-05, %v553_v39 }
 0x309   : > { %831 = vrsqrt.f32 %v554_v40 }
 0x313   : > { %v832_v41 = vpop.eup %831 }
 0x314   : > { %v556_v43 = vmul.f32 %v832_v41, %v548_v35 }
 0x316   : > { %v563_v45 = vmul.f32 %v718_v42, %v556_v43 }
 0x318   : > { %v570_v46 = vadd.f32 %v719_v44, %v563_v45 }
 0x31a   : > { %571 = vst.msk [vmem:[%s1050_s16] sm:$0xff] %vm348_vm2, %v570_v46 }
 0x31b   : > { %846 = shalt.err (!%p843_p5)
}
 0x31c   : > { %s847_s12 = scalar_lea.hbm %s1077_s18, 128  ;;  %s851_s30 = scalar_lea.hbm %s1135_s7, 256 }
 0x31d   : > { %p848_p6 = scmp.ne.s32.totalorder %s1077_s18, %s847_s12  ;;  %p852_p10 = scmp.lt.u32.totalorder %s1077_s18, %s1135_s7 }
 0x31e   : > { %p853_p11 = scmp.lt.u32.totalorder %s851_s30, %s847_s12  ;;  %p855_p13 = scmp.lt.u32.totalorder %s847_s12, %s1077_s18 }
 0x31f   : > { %p849_p7 = pnand %p848_p6, %p996_p4 }
 0x320   : > { %p854_p12 = por %p853_p11, %p852_p10 }
 0x321   : > { %p850_p9 = pneg %p849_p7 }
 0x322   : > { %p856_p0 = por %p855_p13, %p854_p12 }
 0x324   : > { %p857_p1 = pnand %p856_p0, %p850_p9 }
 0x326   : > { %860 = shalt.err (!%p857_p1)
}
 0x327   : > { %764 = dma.vmem_to_hbm [thread:$0]  (%p996_p4), %s1079_s10, 128, %s1077_s18, %s573_s19  }
 0x328 PF: > { %p770_p2 = scmp.ge.s32.totalorder %s911_s29, 2  ;;  %s598_s17 = sand.u32 1, %s891_s24  }
 0x329   : > { %s599_s20 = scalar_lea.sflag [#allocation4], %s598_s17 }
 0x32a   : > { %p767_p3 = pnand %p770_p2, %p1003_p8 }
 0x32c   : > { %886 = dma.done.wait (!%p767_p3), %s599_s20, 128  }
 0x32d   : > { %888 = vsyncadd (!%p767_p3), %s599_s20, 4294967168  ;;  %s20_s29 = sadd.s32 1, %s911_s29   ;;  %s1138_s24 = smov %s895_s25 }
 0x32e   : > { %p17_p5 = scmp.ge.s32.totalorder %s20_s29, 4   ;;  %s1139_s25 = smov %s899_s26 }
 0x32f   : > { %s1140_s26 = smov %s1009_s14  ;;  %s1141_s27 = smov %s907_s28 }
 0x330   : > { %s1142_s28 = smov %s1144_s9  ;;  %19 = sbr.rel (!%p17_p5) target bundleno = 4 (0x4), region = 100 }
 0x337   :  { %604 = vsyncpa [#allocation4], 1 }
 0x338   :  { %606 = vsyncpa [#allocation4 + $0x1], 1 }

// kernel: tpu_custom_call.1
= control target key start
LH: loop header
LB: loop body
LE: loop exit
PB: predicated region body
PF: predicated region fallthrough
CT: control target
= control target key end

     0   :  { %12 = vsyncpa [#allocation4], 0  ;;  %s1128_s0 = inlined_call_operand.vmem [shape: f32[16,32], index: 0, kind: input, shape index: {}]   ;;  %s1129_s1 = inlined_call_operand.vmem [shape: bf16[32,128], index: 1, kind: input, shape index: {}]   ;;  %s1130_s2 = inlined_call_operand.vmem [shape: f32[1,128], index: 2, kind: input, shape index: {}]   ;;  %s1131_s3 = inlined_call_operand.vmem [shape: bf16[128,32], index: 3, kind: input, shape index: {}]   ;;  %s1132_s4 = inlined_call_operand.vmem [shape: f32[1,32], index: 4, kind: input, shape index: {}]   ;;  %s1133_s5 = inlined_call_operand.vmem [shape: f32[1,32], index: 5, kind: input, shape index: {}]   ;;  %s1134_s6 = inlined_call_operand.vmem [shape: f32[1,32], index: 6, kind: input, shape index: {}]   ;;  %s1135_s7 = inlined_call_operand.hbm [shape: f32[16,32], index: 7, kind: output, shape index: {}]  }
   0x1   :  { %14 = vsyncpa [#allocation4 + $0x1], 0  ;;  %s956_s24 = smov 0   ;;  %s958_s25 = smov 0  }
   0x2   :  { %s960_s26 = smov 0   ;;  %s962_s27 = smov 0  }
   0x3   :  { %s964_s28 = smov 0   ;;  %s966_s29 = smov 0  }
   0x4 LB: > { %s695_s30 = sadd.s32 4294967295, %s911_s29   ;;  %s696_s8 = sadd.s32 4294967294, %s911_s29   ;;  %s911_s29 = sphi %s966_s29, %s20_s29   ;;  %s907_s28 = sphi %s964_s28, %s1142_s28   ;;  %s903_s27 = sphi %s962_s27, %s1141_s27   ;;  %s899_s26 = sphi %s960_s26, %s1140_s26   ;;  %s895_s25 = sphi %s958_s25, %s1139_s25   ;;  %s891_s24 = sphi %s956_s24, %s1138_s24  }
   0x5   : > { %s32_s9 = sadd.s32 1, %s907_s28  ;;  %s206_s10 = sadd.s32 1, %s899_s26 }
   0x6   : > { %p34_p0 = scmp.ge.s32.totalorder %s32_s9, 2  ;;  %p216_p1 = scmp.ne.s32.totalorder %s899_s26, %s895_s25 }
   0x7   : > { %p217_p2 = scmp.eq.s32.totalorder %s695_s30, 1  ;;  %p222_p3 = scmp.ne.s32.totalorder %s895_s25, %s891_s24 }
   0x8   : > { %s1144_s9 = smov (%p34_p0, %s32_s9), 0  ;;  %p223_p5 = scmp.eq.s32.totalorder %s696_s8, 1 }
   0x9   : > { %p996_p4 = por %p217_p2, %p216_p1  ;;  %s203_s12 = ssub.s32 %s907_s28, %s1144_s9 }
   0xa   : > { %p702_p6 = scmp.ge.s32.totalorder %s911_s29, 1  ;;  %p204_p7 = scmp.eq.s32.totalorder %s203_s12, 0 }
   0xb   : > { %p1003_p8 = por %p223_p5, %p222_p3  ;;  %p279_p9 = scmp.lt.s32.totalorder %s911_s29, 3 }
   0xc   : > { %s1009_s14 = scalar_select %p204_p7, %s899_s26, %s206_s10  }
   0xd   : > { %p280_p10 = pnand %p702_p6, %p279_p9 }
   0xe   : > { %v821_v0 = vld [vmem:[%s1129_s1] sm:$0xff] (!%p280_p10)   ;;  %v913_v1 = vmov (!%p280_p10), 0.0   ;;  %v822_v2 = vld [vmem:[%s1129_s1 + $0x8] sm:$0xff] (!%p280_p10)   ;;  %vm914_vm0 = vmmov (!%p280_p10), 0   ;;  %p322_p11 = scmp.lt.s32.totalorder (!%p280_p10), %s903_s27, 1  ;;  %vm346_vm1 = vcmask (!%p280_p10), 257024  }
   0xf   : > { %283 = sbr.rel (%p280_p10) target bundleno = 808 (0x328), region = 48  ;;  %736 = vmatprep.subr.bf16.mxu0 (!%p280_p10), %v913_v1  ;;  %744 = vmatprep.subr.bf16.mxu1 (!%p280_p10), %v913_v1  ;;  %v823_v3 = vld [vmem:[%s1131_s3] sm:$0xff] (!%p280_p10)   ;;  %v824_v4 = vld [vmem:[%s1131_s3 + $0x8] sm:$0xff] (!%p280_p10)   ;;  %v825_v6 = vld [vmem:[%s1131_s3 + $0x10] sm:$0xff] (!%p280_p10)   ;;  %vm348_vm2 = vcmask (!%p280_p10), 261120   ;;  %s721_s8 = sshll.u32 (!%p280_p10), %s903_s27, 7 }
  0x10   : > { %737 = vmatpush3.bf16.msra.mxu0 (!%p280_p10), %v821_v0  ;;  %740 = vmatprep.mubr.msk.bf16.mxu0 (!%p280_p10), %vm914_vm0, %v913_v1  ;;  %v826_v8 = vld [vmem:[%s1131_s3 + $0x18] sm:$0xff] (!%p280_p10)   ;;  %v827_v9 = vld [vmem:[%s1131_s3 + $0x20] sm:$0xff] (!%p280_p10)   ;;  %v828_v11 = vld [vmem:[%s1131_s3 + $0x28] sm:$0xff] (!%p280_p10)   ;;  %s1077_s18 = scalar_lea.hbm (!%p280_p10), %s1135_s7, %s721_s8 }
  0x11   : > { %738 = vmatprep.subr.bf16.mxu0 (!%p280_p10), %v913_v1  ;;  %760 = vmatprep.mubr.msk.bf16.mxu1 (!%p280_p10), %vm914_vm0, %v913_v1  ;;  %v829_v12 = vld [vmem:[%s1131_s3 + $0x30] sm:$0xff] (!%p280_p10)   ;;  %v830_v13 = vld [vmem:[%s1131_s3 + $0x38] sm:$0xff] (!%p280_p10)   ;;  %v705_v14 = vld [vmem:[%s1130_s2] ss:$0 sm:$0xff] (!%p280_p10) }
  0x12   : > { %745 = vmatpush3.bf16.msra.mxu1 (!%p280_p10), %v823_v3  ;;  %v717_v28 = vld [vmem:[%s1132_s4] ss:$0 sm:$0xff] (!%p280_p10) }
  0x13   : > { %746 = vmatprep.subr.bf16.mxu1 (!%p280_p10), %v913_v1  ;;  %v718_v42 = vld [vmem:[%s1133_s5] ss:$0 sm:$0xff] (!%p280_p10) }
  0x14   : > { %739 = vmatpush3.bf16.msra.mxu0 (!%p280_p10), %v822_v2  ;;  %v719_v44 = vld [vmem:[%s1134_s6] ss:$0 sm:$0xff] (!%p280_p10) }
  0x16   : > { %s323_s21 = scalar_select %p322_p11, %s903_s27, 1  ;;  %747 = vmatpush3.bf16.msra.mxu1 %v824_v4 }
  0x17   : > { %748 = vmatprep.subr.bf16.mxu1 %v913_v1  ;;  %s915_s27 = smov [#allocation3]  }
  0x18   : > { %s704_s30 = sshll.u32 %s323_s21, 3  ;;  %s837_s21 = sshll.u32 %s915_s27, 4  ;;  %s838_s21 = int_to_ptr.vmem [resolvable:$false] %s837_s21 }
  0x19   : > { %s325_s12 = scalar_lea.vmem %s1128_s0, %s704_s30  ;;  %s839_s22 = scalar_lea.vmem %s838_s21, 256 }
  0x1a   : > { %v344_v5 = vld [vmem:[%s325_s12] sm:$0xff]  ;;  %749 = vmatpush3.bf16.msra.mxu1 %v825_v6  ;;  %s319_s12 = sand.u32 1, %s895_s25  }
  0x1b   : > { %v345_v7 = vpack.c.bf16 %v344_v5, %v344_v5  ;;  %750 = vmatprep.subr.bf16.mxu1 %v913_v1  ;;  %s703_s15 = sshll.u32 %s319_s12, 3  ;;  %s573_s19 = scalar_lea.sflag [#allocation4], %s319_s12 }
  0x1c   : > { %s1050_s16 = scalar_lea.vmem [#allocation3], %s703_s15 }
  0x1d   : > { %347 = vst.msk [vmem:[#allocation2] sm:$0xf] %vm346_vm1, %v345_v7  ;;  %s586_s10 = sshll.u32 %s1050_s16, 4  ;;  %s1079_s10 = int_to_ptr.vmem [resolvable:$true] %s586_s10 }
  0x1e   : > { %751 = vmatpush3.bf16.msra.mxu1 %v826_v8  ;;  %349 = vst.msk [vmem:[%s1050_s16] sm:$0xff] %vm348_vm2, %v913_v1  ;;  %s833_s20 = scalar_lea.vmem %s1079_s10, 128  ;;  %p840_p1 = scmp.lt.s32.totalorder %s1079_s10, %s838_s21 }
  0x1f   : > { %752 = vmatprep.subr.bf16.mxu1 %v913_v1  ;;  %p834_p12 = scmp.ne.s32.totalorder %s1079_s10, %s833_s20  ;;  %p841_p2 = scmp.lt.s32.totalorder %s839_s22, %s833_s20 }
  0x21   : > { %p835_p13 = pnand %p834_p12, %p996_p4  ;;  %p842_p3 = por %p841_p2, %p840_p1 }
  0x22   : > { %753 = vmatpush3.bf16.msra.mxu1 %v827_v9 }
  0x23   : > { %754 = vmatprep.subr.bf16.mxu1 %v913_v1  ;;  %p836_p0 = pneg %p835_p13 }
  0x24   : > { %v350_v10 = vld [vmem:[#allocation2] sm:$0xf] }
  0x25   : > { %741 = vmatmul.mubr.msk.bf16.vlgmr.msra.gmra.mrb[0].mxu0 %vm348_vm2, %v350_v10  ;;  %v419_v22 = vld [vmem:[%s1050_s16] sm:$0xff]  ;;  %p843_p5 = pnand %p842_p3, %p836_p0 }
  0x26   : > { %755 = vmatpush3.bf16.msra.mxu1 %v828_v11 }
  0x27   : > { %756 = vmatprep.subr.bf16.mxu1 %v913_v1 }
  0x2a   : > { %757 = vmatpush3.bf16.msra.mxu1 %v829_v12 }
  0x2b   : > { %758 = vmatprep.subr.bf16.mxu1 %v913_v1 }
  0x2e   : > { %759 = vmatpush3.bf16.msra.mxu1 %v830_v13 }
  0xf8   : > { %v412_v15 = vpop.f32.mrb[0].mxu0 }
  0xf9   : > { %v413_v16 = vadd.f32 %v705_v14, %v412_v15  ;;  %v742_v17 = vpop.f32.mrb[1].mxu0 }
  0xfa   : > { %v415_v18 = vpop.f32.mrb[2].mxu0 }
  0xfb   : > { %v418_v19 = vmax.f32 %v413_v16, 0.0  ;;  %v743_v20 = vpop.f32.mrb[3].mxu0 }
  0xfd   : > { %v420_v21 = vpack.c.bf16 %v418_v19, %v418_v19 }
  0xff   : > { %761 = vmatmul.mubr.bf16.vlgmr.msra.gmra.mrb[0].mxu1 %v420_v21 }
 0x1d2   : > { %v519_v23 = vpop.f32.mrb[0].mxu1 }
 0x1d3   : > { %v525_v24 = vadd.f32 %v519_v23, %v419_v22  ;;  %v762_v25 = vpop.f32.mrb[1].mxu1 }
 0x1d4   : > { %v522_v26 = vpop.f32.mrb[2].mxu1 }
 0x1d5   : > { %526 = vst.msk [vmem:[%s1050_s16] sm:$0xff] %vm348_vm2, %v525_v24  ;;  %v763_v27 = vpop.f32.mrb[3].mxu1 }
 0x1dc   : > { %v530_v29 = vld [vmem:[%s1050_s16] sm:$0xff] }
 0x1dd   : > { %v538_v30 = vadd.f32 %v717_v28, %v530_v29 }
 0x1df   : > { %v540_v31 = vadd.f32 %v538_v30, %v344_v5 }
 0x1e1   : > { %v543_v32 = vsel %vm348_vm2, %v540_v31, 0.0 }
 0x1e2   : > { %544 = vadd.xlane.f32.xlu0 %v543_v32 }
 0x26f   : > { %v545_v33 = vpop.xlane.xlu0 %544 }
 0x270   : > { %v547_v34 = vmul.f32 0.03125, %v545_v33 }
 0x272   : > { %v548_v35 = vsub.f32 %v540_v31, %v547_v34 }
 0x274   : > { %v549_v36 = vmul.f32 %v548_v35, %v548_v35 }
 0x276   : > { %v550_v37 = vsel %vm348_vm2, %v549_v36, 0.0 }
 0x277   : > { %551 = vadd.xlane.f32.xlu0 %v550_v37 }
 0x304   : > { %v552_v38 = vpop.xlane.xlu0 %551 }
 0x305   : > { %v553_v39 = vmul.f32 0.03125, %v552_v38 }
 0x307   : > { %v554_v40 = vadd.f32 1e-05, %v553_v39 }
 0x309   : > { %831 = vrsqrt.f32 %v554_v40 }
 0x313   : > { %v832_v41 = vpop.eup %831 }
 0x314   : > { %v556_v43 = vmul.f32 %v832_v41, %v548_v35 }
 0x316   : > { %v563_v45 = vmul.f32 %v718_v42, %v556_v43 }
 0x318   : > { %v570_v46 = vadd.f32 %v719_v44, %v563_v45 }
 0x31a   : > { %571 = vst.msk [vmem:[%s1050_s16] sm:$0xff] %vm348_vm2, %v570_v46 }
 0x31b   : > { %846 = shalt.err (!%p843_p5)
}
 0x31c   : > { %s847_s12 = scalar_lea.hbm %s1077_s18, 128  ;;  %s851_s30 = scalar_lea.hbm %s1135_s7, 256 }
 0x31d   : > { %p848_p6 = scmp.ne.s32.totalorder %s1077_s18, %s847_s12  ;;  %p852_p10 = scmp.lt.u32.totalorder %s1077_s18, %s1135_s7 }
 0x31e   : > { %p853_p11 = scmp.lt.u32.totalorder %s851_s30, %s847_s12  ;;  %p855_p13 = scmp.lt.u32.totalorder %s847_s12, %s1077_s18 }
 0x31f   : > { %p849_p7 = pnand %p848_p6, %p996_p4 }
 0x320   : > { %p854_p12 = por %p853_p11, %p852_p10 }
 0x321   : > { %p850_p9 = pneg %p849_p7 }
 0x322   : > { %p856_p0 = por %p855_p13, %p854_p12 }
 0x324   : > { %p857_p1 = pnand %p856_p0, %p850_p9 }
 0x326   : > { %860 = shalt.err (!%p857_p1)
}
 0x327   : > { %764 = dma.vmem_to_hbm [thread:$0]  (%p996_p4), %s1079_s10, 128, %s1077_s18, %s573_s19  }
 0x328 PF: > { %p770_p2 = scmp.ge.s32.totalorder %s911_s29, 2  ;;  %s598_s17 = sand.u32 1, %s891_s24  }
 0x329   : > { %s599_s20 = scalar_lea.sflag [#allocation4], %s598_s17 }
 0x32a   : > { %p767_p3 = pnand %p770_p2, %p1003_p8 }
 0x32c   : > { %886 = dma.done.wait (!%p767_p3), %s599_s20, 128  }
 0x32d   : > { %888 = vsyncadd (!%p767_p3), %s599_s20, 4294967168  ;;  %s20_s29 = sadd.s32 1, %s911_s29   ;;  %s1138_s24 = smov %s895_s25 }
 0x32e   : > { %p17_p5 = scmp.ge.s32.totalorder %s20_s29, 4   ;;  %s1139_s25 = smov %s899_s26 }
 0x32f   : > { %s1140_s26 = smov %s1009_s14  ;;  %s1141_s27 = smov %s907_s28 }
 0x330   : > { %s1142_s28 = smov %s1144_s9  ;;  %19 = sbr.rel (!%p17_p5) target bundleno = 4 (0x4), region = 100 }
 0x337   :  { %604 = vsyncpa [#allocation4], 1 }
 0x338   :  { %606 = vsyncpa [#allocation4 + $0x1], 1 }

</bundles_post_ra>
